<compile_context>
chip_gen: v7x
topology: tpu7x:2x2x1
jax: 0.10.0
libtpu: 0.0.40
codegen_flags: <defaults>
</compile_context>

<pallas_src>
import jax
import jax.numpy as jnp
from jax import lax
from jax.experimental import pallas as pl
from jax.experimental.pallas import tpu as pltpu

ENCODER_REGULAR_VTH = 0.999


# ---------------------------------------------------------------------------
# VMEM sizing
# ---------------------------------------------------------------------------
def _vmem_budgets():
    """Generation-aware VMEM budgets with a conservative (v7x-sized) fallback.

    Returns (vmem_limit_bytes, out_block_budget, side_budget):
      * vmem_limit_bytes : explicit scoped-VMEM limit passed to Mosaic
        (deterministic across generations; v5e's default is only 16 MiB).
      * out_block_budget : cap on the DOUBLE-BUFFERED output block bytes.
      * side_budget      : cap on f32 side buffers (obs input double-buffer,
        volt/act scratch, init temporaries).
    """
    try:
        cap = int(pltpu.get_tpu_info().vmem_capacity_bytes)
    except Exception:  # pragma: no cover - query unavailable -> be conservative
        cap = 64 * 1024 * 1024  # v7x-sized physical VMEM lower bound
    limit = min(cap // 2, 64 * 1024 * 1024)          # 32 MiB on v7x, 64 MiB on v5e/v6e
    out_budget = min((limit * 2) // 5, 24 * 1024 * 1024)
    side_budget = min(limit // 4, 8 * 1024 * 1024)
    return limit, out_budget, side_budget


def _pick_tile(dim, unit, target):
    """Full extent if the dim is small; otherwise the largest multiple of
    `unit` <= target that divides `dim`; otherwise fall back to the full
    extent (always correct; may cost VMEM for huge ragged dims)."""
    if dim <= target:
        return dim
    t = (target // unit) * unit
    while t >= unit:
        if dim % t == 0:
            return t
        t -= unit
    return dim


def _row_chunk(tb, tn):
    """Rows per register-resident chunk of the (tb, tn) block.

    Sized so volt / pop_act / temporaries for one chunk stay within a handful
    of the 64 vregs, so the unrolled time loop never spills them to VMEM and
    the vector-store slot is left for the actual spike stores."""
    if tb <= 8 or tb % 8 != 0:
        return tb
    # ~8 f32 vregs (8 x 128 elements each) per live array per chunk.
    target = max(8, (8 * 8 * 128) // max(tn, 128))
    target = max(8, (target // 8) * 8)
    best = 8
    c = 16
    while c <= min(target, tb):
        if tb % c == 0:
            best = c
        c += 8
    return best


# ---------------------------------------------------------------------------
# Kernel
# ---------------------------------------------------------------------------
def _encoder_kernel(obs_ref, mean_ref, std_ref, out_ref, volt_ref, act_ref):
    # obs_ref : (TB, TN) f32   observation, repeated over pop_dim (lane dim)
    # mean_ref: (1,  TN) f32   population means
    # std_ref : (1,  TN) f32   population stds
    # out_ref : (Tt, TB, TN)   spike block for the current time chunk
    # volt_ref: (TB, TN) f32   membrane voltage, carried across time chunks
    # act_ref : (TB, TN) f32   population activation, computed once per (i, j)
    t_chunk = pl.program_id(2)

    @pl.when(t_chunk == 0)
    def _init():
        diff = obs_ref[...] - mean_ref[...]
        std = std_ref[...]
        # Same op order as the reference: exp((-0.5 * d^2) / std^2), true
        # divide (amortized over spike_ts timesteps, so its cost is noise).
        act_ref[...] = jnp.exp((-0.5 * (diff * diff)) / (std * std))
        volt_ref[...] = jnp.zeros_like(volt_ref)

    tt, tb, tn = out_ref.shape
    one = jnp.float32(1.0)
    zero = jnp.float32(0.0)

    cb = _row_chunk(tb, tn)
    nchunks = tb // cb

    def run_chunk(act, volt, row_slice):
        # volt / act live in vregs across the (static, unrolled) time loop;
        # only the spike stores touch VMEM.
        for t in range(tt):
            volt = volt + act
            fired = volt > ENCODER_REGULAR_VTH
            spikes = jnp.where(fired, one, zero).astype(out_ref.dtype)
            if row_slice is None:
                out_ref[t] = spikes
            else:
                out_ref[t, row_slice, :] = spikes
            volt = jnp.where(fired, volt - ENCODER_REGULAR_VTH, volt)
        return volt

    if nchunks == 1:
        volt_ref[...] = run_chunk(act_ref[...], volt_ref[...], None)
    else:
        def body(c, carry):
            r0 = pl.multiple_of(c * cb, 8)
            rows = pl.ds(r0, cb)
            volt_ref[rows, :] = run_chunk(act_ref[rows, :], volt_ref[rows, :],
                                          rows)
            return carry

        lax.fori_loop(0, nchunks, body, 0, unroll=False)


# ---------------------------------------------------------------------------
# Wrappers
# ---------------------------------------------------------------------------
def pop_spike_encoder_regular_spike_tbn(obs, mean, std, spike_ts,
                                        *, out_dtype=jnp.bfloat16):
    """Population-coding regular-spike encoder.

    Returns spikes in (spike_ts, B, obs_dim*pop_dim) layout (lane-dense last
    dim), bf16 by default ({0,1} is exact in bf16 and halves HBM writeback).
    For downstream int8 consumers on v5e/v6e, out_dtype=jnp.int8 quarters the
    writeback (keep bf16 on v7x). This is the preferred entry point: it avoids
    the extra full-HBM transpose pass needed for the PyTorch (B, N, T) layout.
    """
    B, obs_dim = obs.shape
    pop_dim = mean.shape[-1]
    N = obs_dim * pop_dim

    # Layout plumbing matching the PyTorch broadcast of obs.view(-1,obs_dim,1)
    # against mean (1, obs_dim, pop_dim), flattened to N = obs_dim*pop_dim.
    # TODO(synk): the repeat costs an extra HBM write+read of B*N*4 bytes
    # (2/T of the f32 output traffic); doing it in-kernel needs a lane-dim
    # reshape whose Mosaic lowering is not guaranteed, so it stays here.
    obs_expanded = jnp.repeat(obs.astype(jnp.float32), pop_dim, axis=1)  # (B, N)
    mean_flat = mean.reshape(1, N).astype(jnp.float32)                   # (1, N)
    std_flat = std.reshape(1, N).astype(jnp.float32)                     # (1, N)

    vmem_limit, out_budget, side_budget = _vmem_budgets()

    itemsize = jnp.dtype(out_dtype).itemsize
    b_unit = {4: 8, 2: 16, 1: 32}.get(itemsize, 8)

    # Lane tile: up to 1024 lanes for long unmasked vst / DMA runs.
    TN = _pick_tile(N, 128, 1024)
    # Time chunk: decouples VMEM block size and unroll length from spike_ts.
    Tt = _pick_tile(spike_ts, 1, 16)
    # Batch tile: bounded by the double-buffered output block budget and by
    # the f32 side buffers (obs input double-buffer, volt/act scratch, init
    # temporaries).
    out_row_bytes = 2 * Tt * TN * itemsize
    side_row_bytes = (2 + 2 + 2) * TN * 4
    tb_cap = max(b_unit, out_budget // out_row_bytes)
    tb_cap = min(tb_cap, max(b_unit, side_budget // side_row_bytes))
    TB = _pick_tile(B, b_unit, tb_cap)

    grid = (B // TB, N // TN, spike_ts // Tt)

    return pl.pallas_call(
        _encoder_kernel,
        out_shape=jax.ShapeDtypeStruct((spike_ts, B, N), out_dtype),
        grid=grid,
        in_specs=[
            pl.BlockSpec((TB, TN), lambda i, j, t: (i, j)),
            pl.BlockSpec((1, TN), lambda i, j, t: (0, j)),
            pl.BlockSpec((1, TN), lambda i, j, t: (0, j)),
        ],
        out_specs=pl.BlockSpec((Tt, TB, TN), lambda i, j, t: (t, i, j)),
        scratch_shapes=[
            pltpu.VMEM((TB, TN), jnp.float32),   # membrane voltage
            pltpu.VMEM((TB, TN), jnp.float32),   # pop_act
        ],
        compiler_params=pltpu.CompilerParams(
            # NOTE(v7x): if xprof shows a single busy TensorCore, switch the
            # batch axis to pltpu.CORE_PARALLEL; plain "parallel" is kept here
            # because it is safe for size-1 grid axes on every generation.
            dimension_semantics=("parallel", "parallel", "arbitrary"),
            vmem_limit_bytes=vmem_limit),
    )(obs_expanded, mean_flat, std_flat)


def pop_spike_encoder_regular_spike(obs, mean, std, spike_ts):
    """PyTorch-parity entry point.

    obs : (B, obs_dim) f32
    mean: (1, obs_dim, pop_dim) f32
    std : (1, obs_dim, pop_dim) f32
    returns pop_spikes: (B, obs_dim*pop_dim, spike_ts) f32

    The kernel writes bf16 (exact for {0,1}); the transpose pass to the
    PyTorch (B, N, T) layout therefore reads half the bytes, and the f32 cast
    fuses into it. Callers that iterate over timesteps should use the _tbn
    entry point and skip this extra HBM pass.
    TODO(synk): for spike_ts >= 128 emit (B, N, T) directly from the kernel
    (lane-dense T) and delete this transpose.
    """
    out_tbn = pop_spike_encoder_regular_spike_tbn(obs, mean, std, spike_ts)
    return jnp.transpose(out_tbn, (1, 2, 0)).astype(jnp.float32)


# ---------------------------------------------------------------------------
# Reference & test
# ---------------------------------------------------------------------------
def _reference(obs, mean, std, spike_ts):
    """Pure-JAX reference mirroring the PyTorch forward."""
    B, obs_dim = obs.shape
    pop_dim = mean.shape[-1]
    N = obs_dim * pop_dim
    o = obs.reshape(-1, obs_dim, 1)
    pop_act = jnp.exp(-0.5 * (o - mean) ** 2 / std**2).reshape(-1, N)
    pop_volt = jnp.zeros((B, N), jnp.float32)
    spikes = []
    for _ in range(spike_ts):
        pop_volt = pop_volt + pop_act
        s = (pop_volt > ENCODER_REGULAR_VTH).astype(jnp.float32)
        spikes.append(s)
        pop_volt = pop_volt - s * ENCODER_REGULAR_VTH
    return jnp.stack(spikes, axis=-1)


if __name__ == "__main__":
    # Small shapes consistent with the module.
    batch = 2
    obs_dim = 4
    pop_dim = 8
    spike_ts = 8
    mean_range = (-3.0, 3.0)
    std_val = 0.15

    # Deterministic parameter initialization (as in __init__).
    delta_mean = (mean_range[1] - mean_range[0]) / (pop_dim - 1)
    mean_row = mean_range[0] + delta_mean * jnp.arange(pop_dim, dtype=jnp.float32)
    mean = jnp.broadcast_to(mean_row, (1, obs_dim, pop_dim)).astype(jnp.float32)
    std = jnp.full((1, obs_dim, pop_dim), std_val, dtype=jnp.float32)

    # Deterministic example input.
    key = jax.random.PRNGKey(0)
    obs = jax.random.normal(key, (batch, obs_dim), dtype=jnp.float32)

    ref = _reference(obs, mean, std, spike_ts)

    # PyTorch-parity layout (B, N, T), float32.
    out = pop_spike_encoder_regular_spike(obs, mean, std, spike_ts)
    out = jax.block_until_ready(out)
    assert out.shape == (batch, obs_dim * pop_dim, spike_ts), out.shape
    assert out.dtype == jnp.float32, out.dtype
    assert jnp.allclose(out, ref, atol=1e-6), "parity layout mismatch vs reference"

    # Performance layout (T, B, N), bf16 default.
    out_tbn = pop_spike_encoder_regular_spike_tbn(obs, mean, std, spike_ts)
    out_tbn = jax.block_until_ready(out_tbn)
    assert out_tbn.shape == (spike_ts, batch, obs_dim * pop_dim), out_tbn.shape
    assert jnp.allclose(out_tbn.astype(jnp.float32),
                        jnp.transpose(ref, (2, 0, 1)), atol=1e-6), "tbn mismatch"

    print("KERNEL_OK")
</pallas_src>

<mosaic_0001>
module attributes {stable_mosaic.version = 11 : i64} {
  func.func @_encoder_kernel(%arg0: i32, %arg1: i32, %arg2: i32, %arg3: memref<2x32xf32, #tpu.memory_space<vmem>>, %arg4: memref<1x32xf32, #tpu.memory_space<vmem>>, %arg5: memref<1x32xf32, #tpu.memory_space<vmem>>, %arg6: memref<8x2x32xbf16, #tpu.memory_space<vmem>>, %arg7: memref<2x32xf32, #tpu.memory_space<vmem>>, %arg8: memref<2x32xf32, #tpu.memory_space<vmem>>) attributes {dimension_semantics = [#tpu.dimension_semantics<parallel>, #tpu.dimension_semantics<parallel>, #tpu.dimension_semantics<arbitrary>], iteration_bounds = array<i64: 1, 1, 1>, scalar_prefetch = 0 : i64, scratch_operands = 2 : i64, tpu.core_type = #tpu.core_type<tc>, window_params = [{transform_indices = @transform_0, window_bounds = array<i64: 2, 32>}, {transform_indices = @transform_1, window_bounds = array<i64: 1, 32>}, {transform_indices = @transform_2, window_bounds = array<i64: 1, 32>}, {transform_indices = @transform_3, window_bounds = array<i64: 8, 2, 32>}]} {
    %c0_i32 = arith.constant 0 : i32
    %0 = arith.cmpi eq, %arg2, %c0_i32 : i32
    %1 = arith.extui %0 : i1 to i32
    %c0_i32_0 = arith.constant 0 : i32
    %2 = arith.cmpi ne, %1, %c0_i32_0 : i32
    scf.if %2 {
      %c0_54 = arith.constant 0 : index
      %c0_55 = arith.constant 0 : index
      %110 = vector.load %arg3[%c0_54, %c0_55] : memref<2x32xf32, #tpu.memory_space<vmem>>, vector<2x32xf32>
      %c0_56 = arith.constant 0 : index
      %c0_57 = arith.constant 0 : index
      %111 = vector.load %arg4[%c0_56, %c0_57] : memref<1x32xf32, #tpu.memory_space<vmem>>, vector<1x32xf32>
      %112 = vector.broadcast %111 : vector<1x32xf32> to vector<2x32xf32>
      %113 = arith.subf %110, %112 : vector<2x32xf32>
      %c0_58 = arith.constant 0 : index
      %c0_59 = arith.constant 0 : index
      %114 = vector.load %arg5[%c0_58, %c0_59] : memref<1x32xf32, #tpu.memory_space<vmem>>, vector<1x32xf32>
      %115 = arith.mulf %113, %113 : vector<2x32xf32>
      %cst_60 = arith.constant -5.000000e-01 : f32
      %116 = vector.broadcast %cst_60 : f32 to vector<2x32xf32>
      %117 = arith.mulf %116, %115 : vector<2x32xf32>
      %118 = arith.mulf %114, %114 : vector<1x32xf32>
      %119 = vector.broadcast %118 : vector<1x32xf32> to vector<2x32xf32>
      %120 = arith.divf %117, %119 : vector<2x32xf32>
      %121 = math.exp %120 : vector<2x32xf32>
      %c0_61 = arith.constant 0 : index
      %c0_62 = arith.constant 0 : index
      %122 = vector.load %arg8[%c0_61, %c0_62] : memref<2x32xf32, #tpu.memory_space<vmem>>, vector<2x32xf32>
      tpu.vector_store %arg8[%c0_61, %c0_62], %121 {strides = array<i32>} : memref<2x32xf32, #tpu.memory_space<vmem>>, vector<2x32xf32>,
      %cst_63 = arith.constant 0.000000e+00 : f32
      %123 = vector.broadcast %cst_63 : f32 to vector<2x32xf32>
      %c0_64 = arith.constant 0 : index
      %c0_65 = arith.constant 0 : index
      %124 = vector.load %arg7[%c0_64, %c0_65] : memref<2x32xf32, #tpu.memory_space<vmem>>, vector<2x32xf32>
      tpu.vector_store %arg7[%c0_64, %c0_65], %123 {strides = array<i32>} : memref<2x32xf32, #tpu.memory_space<vmem>>, vector<2x32xf32>,
    } else {
    }
    %c0 = arith.constant 0 : index
    %c0_1 = arith.constant 0 : index
    %3 = vector.load %arg8[%c0, %c0_1] : memref<2x32xf32, #tpu.memory_space<vmem>>, vector<2x32xf32>
    %c0_2 = arith.constant 0 : index
    %c0_3 = arith.constant 0 : index
    %4 = vector.load %arg7[%c0_2, %c0_3] : memref<2x32xf32, #tpu.memory_space<vmem>>, vector<2x32xf32>
    %5 = arith.addf %4, %3 : vector<2x32xf32>
    %cst = arith.constant 9.990000e-01 : f32
    %6 = vector.broadcast %cst : f32 to vector<2x32xf32>
    %7 = arith.cmpf ogt, %5, %6 : vector<2x32xf32>
    %cst_4 = arith.constant 1.000000e+00 : f32
    %cst_5 = arith.constant 0.000000e+00 : f32
    %8 = vector.broadcast %cst_4 : f32 to vector<2x32xf32>
    %9 = vector.broadcast %cst_5 : f32 to vector<2x32xf32>
    %10 = arith.select %7, %8, %9 : vector<2x32xi1>, vector<2x32xf32>
    %11 = arith.truncf %10 : vector<2x32xf32> to vector<2x32xbf16>
    %c0_6 = arith.constant 0 : index
    %c0_7 = arith.constant 0 : index
    %c0_8 = arith.constant 0 : index
    %12 = vector.load %arg6[%c0_6, %c0_7, %c0_8] : memref<8x2x32xbf16, #tpu.memory_space<vmem>>, vector<1x2x32xbf16>
    %13 = vector.shape_cast %12 : vector<1x2x32xbf16> to vector<2x32xbf16>
    %14 = vector.shape_cast %11 : vector<2x32xbf16> to vector<1x2x32xbf16>
    tpu.vector_store %arg6[%c0_6, %c0_7, %c0_8], %14 {strides = array<i32>} : memref<8x2x32xbf16, #tpu.memory_space<vmem>>, vector<1x2x32xbf16>,
    %cst_9 = arith.constant 9.990000e-01 : f32
    %15 = vector.broadcast %cst_9 : f32 to vector<2x32xf32>
    %16 = arith.subf %5, %15 : vector<2x32xf32>
    %17 = arith.select %7, %16, %5 : vector<2x32xi1>, vector<2x32xf32>
    %18 = arith.addf %17, %3 : vector<2x32xf32>
    %cst_10 = arith.constant 9.990000e-01 : f32
    %19 = vector.broadcast %cst_10 : f32 to vector<2x32xf32>
    %20 = arith.cmpf ogt, %18, %19 : vector<2x32xf32>
    %cst_11 = arith.constant 1.000000e+00 : f32
    %cst_12 = arith.constant 0.000000e+00 : f32
    %21 = vector.broadcast %cst_11 : f32 to vector<2x32xf32>
    %22 = vector.broadcast %cst_12 : f32 to vector<2x32xf32>
    %23 = arith.select %20, %21, %22 : vector<2x32xi1>, vector<2x32xf32>
    %24 = arith.truncf %23 : vector<2x32xf32> to vector<2x32xbf16>
    %c1 = arith.constant 1 : index
    %c0_13 = arith.constant 0 : index
    %c0_14 = arith.constant 0 : index
    %25 = vector.load %arg6[%c1, %c0_13, %c0_14] : memref<8x2x32xbf16, #tpu.memory_space<vmem>>, vector<1x2x32xbf16>
    %26 = vector.shape_cast %25 : vector<1x2x32xbf16> to vector<2x32xbf16>
    %27 = vector.shape_cast %24 : vector<2x32xbf16> to vector<1x2x32xbf16>
    tpu.vector_store %arg6[%c1, %c0_13, %c0_14], %27 {strides = array<i32>} : memref<8x2x32xbf16, #tpu.memory_space<vmem>>, vector<1x2x32xbf16>,
    %cst_15 = arith.constant 9.990000e-01 : f32
    %28 = vector.broadcast %cst_15 : f32 to vector<2x32xf32>
    %29 = arith.subf %18, %28 : vector<2x32xf32>
    %30 = arith.select %20, %29, %18 : vector<2x32xi1>, vector<2x32xf32>
    %31 = arith.addf %30, %3 : vector<2x32xf32>
    %cst_16 = arith.constant 9.990000e-01 : f32
    %32 = vector.broadcast %cst_16 : f32 to vector<2x32xf32>
    %33 = arith.cmpf ogt, %31, %32 : vector<2x32xf32>
    %cst_17 = arith.constant 1.000000e+00 : f32
    %cst_18 = arith.constant 0.000000e+00 : f32
    %34 = vector.broadcast %cst_17 : f32 to vector<2x32xf32>
    %35 = vector.broadcast %cst_18 : f32 to vector<2x32xf32>
    %36 = arith.select %33, %34, %35 : vector<2x32xi1>, vector<2x32xf32>
    %37 = arith.truncf %36 : vector<2x32xf32> to vector<2x32xbf16>
    %c2 = arith.constant 2 : index
    %c0_19 = arith.constant 0 : index
    %c0_20 = arith.constant 0 : index
    %38 = vector.load %arg6[%c2, %c0_19, %c0_20] : memref<8x2x32xbf16, #tpu.memory_space<vmem>>, vector<1x2x32xbf16>
    %39 = vector.shape_cast %38 : vector<1x2x32xbf16> to vector<2x32xbf16>
    %40 = vector.shape_cast %37 : vector<2x32xbf16> to vector<1x2x32xbf16>
    tpu.vector_store %arg6[%c2, %c0_19, %c0_20], %40 {strides = array<i32>} : memref<8x2x32xbf16, #tpu.memory_space<vmem>>, vector<1x2x32xbf16>,
    %cst_21 = arith.constant 9.990000e-01 : f32
    %41 = vector.broadcast %cst_21 : f32 to vector<2x32xf32>
    %42 = arith.subf %31, %41 : vector<2x32xf32>
    %43 = arith.select %33, %42, %31 : vector<2x32xi1>, vector<2x32xf32>
    %44 = arith.addf %43, %3 : vector<2x32xf32>
    %cst_22 = arith.constant 9.990000e-01 : f32
    %45 = vector.broadcast %cst_22 : f32 to vector<2x32xf32>
    %46 = arith.cmpf ogt, %44, %45 : vector<2x32xf32>
    %cst_23 = arith.constant 1.000000e+00 : f32
    %cst_24 = arith.constant 0.000000e+00 : f32
    %47 = vector.broadcast %cst_23 : f32 to vector<2x32xf32>
    %48 = vector.broadcast %cst_24 : f32 to vector<2x32xf32>
    %49 = arith.select %46, %47, %48 : vector<2x32xi1>, vector<2x32xf32>
    %50 = arith.truncf %49 : vector<2x32xf32> to vector<2x32xbf16>
    %c3 = arith.constant 3 : index
    %c0_25 = arith.constant 0 : index
    %c0_26 = arith.constant 0 : index
    %51 = vector.load %arg6[%c3, %c0_25, %c0_26] : memref<8x2x32xbf16, #tpu.memory_space<vmem>>, vector<1x2x32xbf16>
    %52 = vector.shape_cast %51 : vector<1x2x32xbf16> to vector<2x32xbf16>
    %53 = vector.shape_cast %50 : vector<2x32xbf16> to vector<1x2x32xbf16>
    tpu.vector_store %arg6[%c3, %c0_25, %c0_26], %53 {strides = array<i32>} : memref<8x2x32xbf16, #tpu.memory_space<vmem>>, vector<1x2x32xbf16>,
    %cst_27 = arith.constant 9.990000e-01 : f32
    %54 = vector.broadcast %cst_27 : f32 to vector<2x32xf32>
    %55 = arith.subf %44, %54 : vector<2x32xf32>
    %56 = arith.select %46, %55, %44 : vector<2x32xi1>, vector<2x32xf32>
    %57 = arith.addf %56, %3 : vector<2x32xf32>
    %cst_28 = arith.constant 9.990000e-01 : f32
    %58 = vector.broadcast %cst_28 : f32 to vector<2x32xf32>
    %59 = arith.cmpf ogt, %57, %58 : vector<2x32xf32>
    %cst_29 = arith.constant 1.000000e+00 : f32
    %cst_30 = arith.constant 0.000000e+00 : f32
    %60 = vector.broadcast %cst_29 : f32 to vector<2x32xf32>
    %61 = vector.broadcast %cst_30 : f32 to vector<2x32xf32>
    %62 = arith.select %59, %60, %61 : vector<2x32xi1>, vector<2x32xf32>
    %63 = arith.truncf %62 : vector<2x32xf32> to vector<2x32xbf16>
    %c4 = arith.constant 4 : index
    %c0_31 = arith.constant 0 : index
    %c0_32 = arith.constant 0 : index
    %64 = vector.load %arg6[%c4, %c0_31, %c0_32] : memref<8x2x32xbf16, #tpu.memory_space<vmem>>, vector<1x2x32xbf16>
    %65 = vector.shape_cast %64 : vector<1x2x32xbf16> to vector<2x32xbf16>
    %66 = vector.shape_cast %63 : vector<2x32xbf16> to vector<1x2x32xbf16>
    tpu.vector_store %arg6[%c4, %c0_31, %c0_32], %66 {strides = array<i32>} : memref<8x2x32xbf16, #tpu.memory_space<vmem>>, vector<1x2x32xbf16>,
    %cst_33 = arith.constant 9.990000e-01 : f32
    %67 = vector.broadcast %cst_33 : f32 to vector<2x32xf32>
    %68 = arith.subf %57, %67 : vector<2x32xf32>
    %69 = arith.select %59, %68, %57 : vector<2x32xi1>, vector<2x32xf32>
    %70 = arith.addf %69, %3 : vector<2x32xf32>
    %cst_34 = arith.constant 9.990000e-01 : f32
    %71 = vector.broadcast %cst_34 : f32 to vector<2x32xf32>
    %72 = arith.cmpf ogt, %70, %71 : vector<2x32xf32>
    %cst_35 = arith.constant 1.000000e+00 : f32
    %cst_36 = arith.constant 0.000000e+00 : f32
    %73 = vector.broadcast %cst_35 : f32 to vector<2x32xf32>
    %74 = vector.broadcast %cst_36 : f32 to vector<2x32xf32>
    %75 = arith.select %72, %73, %74 : vector<2x32xi1>, vector<2x32xf32>
    %76 = arith.truncf %75 : vector<2x32xf32> to vector<2x32xbf16>
    %c5 = arith.constant 5 : index
    %c0_37 = arith.constant 0 : index
    %c0_38 = arith.constant 0 : index
    %77 = vector.load %arg6[%c5, %c0_37, %c0_38] : memref<8x2x32xbf16, #tpu.memory_space<vmem>>, vector<1x2x32xbf16>
    %78 = vector.shape_cast %77 : vector<1x2x32xbf16> to vector<2x32xbf16>
    %79 = vector.shape_cast %76 : vector<2x32xbf16> to vector<1x2x32xbf16>
    tpu.vector_store %arg6[%c5, %c0_37, %c0_38], %79 {strides = array<i32>} : memref<8x2x32xbf16, #tpu.memory_space<vmem>>, vector<1x2x32xbf16>,
    %cst_39 = arith.constant 9.990000e-01 : f32
    %80 = vector.broadcast %cst_39 : f32 to vector<2x32xf32>
    %81 = arith.subf %70, %80 : vector<2x32xf32>
    %82 = arith.select %72, %81, %70 : vector<2x32xi1>, vector<2x32xf32>
    %83 = arith.addf %82, %3 : vector<2x32xf32>
    %cst_40 = arith.constant 9.990000e-01 : f32
    %84 = vector.broadcast %cst_40 : f32 to vector<2x32xf32>
    %85 = arith.cmpf ogt, %83, %84 : vector<2x32xf32>
    %cst_41 = arith.constant 1.000000e+00 : f32
    %cst_42 = arith.constant 0.000000e+00 : f32
    %86 = vector.broadcast %cst_41 : f32 to vector<2x32xf32>
    %87 = vector.broadcast %cst_42 : f32 to vector<2x32xf32>
    %88 = arith.select %85, %86, %87 : vector<2x32xi1>, vector<2x32xf32>
    %89 = arith.truncf %88 : vector<2x32xf32> to vector<2x32xbf16>
    %c6 = arith.constant 6 : index
    %c0_43 = arith.constant 0 : index
    %c0_44 = arith.constant 0 : index
    %90 = vector.load %arg6[%c6, %c0_43, %c0_44] : memref<8x2x32xbf16, #tpu.memory_space<vmem>>, vector<1x2x32xbf16>
    %91 = vector.shape_cast %90 : vector<1x2x32xbf16> to vector<2x32xbf16>
    %92 = vector.shape_cast %89 : vector<2x32xbf16> to vector<1x2x32xbf16>
    tpu.vector_store %arg6[%c6, %c0_43, %c0_44], %92 {strides = array<i32>} : memref<8x2x32xbf16, #tpu.memory_space<vmem>>, vector<1x2x32xbf16>,
    %cst_45 = arith.constant 9.990000e-01 : f32
    %93 = vector.broadcast %cst_45 : f32 to vector<2x32xf32>
    %94 = arith.subf %83, %93 : vector<2x32xf32>
    %95 = arith.select %85, %94, %83 : vector<2x32xi1>, vector<2x32xf32>
    %96 = arith.addf %95, %3 : vector<2x32xf32>
    %cst_46 = arith.constant 9.990000e-01 : f32
    %97 = vector.broadcast %cst_46 : f32 to vector<2x32xf32>
    %98 = arith.cmpf ogt, %96, %97 : vector<2x32xf32>
    %cst_47 = arith.constant 1.000000e+00 : f32
    %cst_48 = arith.constant 0.000000e+00 : f32
    %99 = vector.broadcast %cst_47 : f32 to vector<2x32xf32>
    %100 = vector.broadcast %cst_48 : f32 to vector<2x32xf32>
    %101 = arith.select %98, %99, %100 : vector<2x32xi1>, vector<2x32xf32>
    %102 = arith.truncf %101 : vector<2x32xf32> to vector<2x32xbf16>
    %c7 = arith.constant 7 : index
    %c0_49 = arith.constant 0 : index
    %c0_50 = arith.constant 0 : index
    %103 = vector.load %arg6[%c7, %c0_49, %c0_50] : memref<8x2x32xbf16, #tpu.memory_space<vmem>>, vector<1x2x32xbf16>
    %104 = vector.shape_cast %103 : vector<1x2x32xbf16> to vector<2x32xbf16>
    %105 = vector.shape_cast %102 : vector<2x32xbf16> to vector<1x2x32xbf16>
    tpu.vector_store %arg6[%c7, %c0_49, %c0_50], %105 {strides = array<i32>} : memref<8x2x32xbf16, #tpu.memory_space<vmem>>, vector<1x2x32xbf16>,
    %cst_51 = arith.constant 9.990000e-01 : f32
    %106 = vector.broadcast %cst_51 : f32 to vector<2x32xf32>
    %107 = arith.subf %96, %106 : vector<2x32xf32>
    %108 = arith.select %98, %107, %96 : vector<2x32xi1>, vector<2x32xf32>
    %c0_52 = arith.constant 0 : index
    %c0_53 = arith.constant 0 : index
    %109 = vector.load %arg7[%c0_52, %c0_53] : memref<2x32xf32, #tpu.memory_space<vmem>>, vector<2x32xf32>
    tpu.vector_store %arg7[%c0_52, %c0_53], %108 {strides = array<i32>} : memref<2x32xf32, #tpu.memory_space<vmem>>, vector<2x32xf32>,
    return
  }
  func.func @transform_0(%arg0: i32, %arg1: i32, %arg2: i32) -> (i32, i32) {
    %c0_i32 = arith.constant 0 : i32
    return %arg0, %arg1 : i32, i32
  }
  func.func @transform_1(%arg0: i32, %arg1: i32, %arg2: i32) -> (i32, i32) {
    %c0_i32 = arith.constant 0 : i32
    %c0_i32_0 = arith.constant 0 : i32
    return %c0_i32, %arg1 : i32, i32
  }
  func.func @transform_2(%arg0: i32, %arg1: i32, %arg2: i32) -> (i32, i32) {
    %c0_i32 = arith.constant 0 : i32
    %c0_i32_0 = arith.constant 0 : i32
    return %c0_i32, %arg1 : i32, i32
  }
  func.func @transform_3(%arg0: i32, %arg1: i32, %arg2: i32) -> (i32, i32, i32) {
    %c0_i32 = arith.constant 0 : i32
    return %arg2, %arg0, %arg1 : i32, i32, i32
  }
}

</mosaic_0001>

<bundles_post_ra>
// kernel: tpu_custom_call.1
= control target key start
LH: loop header
LB: loop body
LE: loop exit
PB: predicated region body
PF: predicated region fallthrough
CT: control target
= control target key end

     0   :  { %8 = vsyncpa [#allocation5], 0  ;;  %s283_s0 = inlined_call_operand.hbm [shape: f32[2,32], index: 0, kind: input, shape index: {}]   ;;  %s284_s1 = inlined_call_operand.vmem [shape: f32[1,32], index: 1, kind: input, shape index: {}]   ;;  %s285_s2 = inlined_call_operand.vmem [shape: f32[1,32], index: 2, kind: input, shape index: {}]   ;;  %s286_s3 = inlined_call_operand.hbm [shape: bf16[8,2,32], index: 3, kind: output, shape index: {}]  }
   0x1   :  { %9 = vsyncpa [#allocation6], 0  ;;  %s208_s12 = smov [#allocation4]   ;;  %s160_s16 = scalar_lea.hbm %s283_s0, 32 }
   0x2   :  { %s16_s13 = sshll.u32 %s208_s12, 4  ;;  %p161_p0 = scmp.ne.s32.totalorder %s283_s0, %s160_s16  ;;  %s17_s13 = int_to_ptr.vmem [resolvable:$true] %s16_s13 }
   0x3   :  { %p164_p1 = scmp.lt.u32.totalorder %s160_s16, %s283_s0 }
   0x5   :  { %p166_p2 = pnand %p164_p1, %p161_p0 }
   0x7   :  { %169 = shalt.err (!%p166_p2)
}
   0x8   :  { %s170_s21 = scalar_lea.vmem %s17_s13, 32  ;;  %p175_p4 = scmp.lt.s32.totalorder %s17_s13, %s17_s13 }
   0x9   :  { %p171_p3 = scmp.ne.s32.totalorder %s17_s13, %s170_s21  ;;  %p176_p5 = scmp.lt.s32.totalorder %s170_s21, %s170_s21 }
   0xb   :  { %p177_p6 = por %p176_p5, %p175_p4 }
   0xd   :  { %p178_p7 = pnand %p177_p6, %p171_p3 }
   0xf   :  { %181 = shalt.err (!%p178_p7)
}
  0x10   :  { %19 = dma.hbm_to_vmem [thread:$0]  %s283_s0, 32, %s17_s13, [#allocation5]  }
  0x11   :  { %204 = dma.done.wait [#allocation5], 32  }
  0x12   :  { %205 = vsyncadd [#allocation5], 4294967264  ;;  %v45_v0 = vlaneseq  ;;  %vm54_vm0 = vcmask 254976   ;;  %v209_v1 = vmov 0.0   ;;  %v40_v4 = vld [vmem:[%s285_s2] sm:$0x1] }
  0x13   :  { %56 = vst.msk [vmem:[#allocation2] sm:$0x3] %vm54_vm0, %v209_v1  ;;  %v31_v5 = vld [vmem:[#allocation4] sm:$0x3]  ;;  %v142_v6 = vld [vmem:[%s284_s1] ss:$0 sm:$0xff]  ;;  %v43_v7 = vmul.f32 %v40_v4, %v40_v4 }
  0x14   :  { %v46_v2 = vshrl.u32 %v45_v0, 7  ;;  %v39_v9 = vsub.f32 %v31_v5, %v142_v6  ;;  %vm63_vm2 = vcmask 253952   ;;  %s210_s0 = smov [#allocation7]  }
  0x15   :  { %s130_s1 = sshll.u32 %s210_s0, 4  ;;  %s131_s1 = int_to_ptr.vmem [resolvable:$true] %s130_s1 }
  0x16   :  { %v47_v3 = vsub.s32 0, %v46_v2  ;;  %v41_v10 = vmul.f32 %v39_v9, %v39_v9  ;;  %s182_s2 = scalar_lea.vmem %s131_s1, 128  ;;  %p187_p9 = scmp.lt.s32.totalorder %s131_s1, %s131_s1 }
  0x17   :  { %p183_p8 = scmp.ne.s32.totalorder %s131_s1, %s182_s2  ;;  %p188_p10 = scmp.lt.s32.totalorder %s182_s2, %s182_s2 }
  0x18   :  { %v48_v8 = vrot.slane %v43_v7, %v47_v3  ;;  %v42_v11 = vmul.f32 -0.5, %v41_v10 }
  0x19   :  { %p189_p11 = por %p188_p10, %p187_p9 }
  0x1a   :  { %156 = vrcp.f32 %v48_v8  ;;  %v58_v16 = vld [vmem:[#allocation2] sm:$0x3] }
  0x1b   :  { %p190_p12 = pnand %p189_p11, %p183_p8 }
  0x24   :  { %v157_v12 = vpop.eup %156 }
  0x25   :  { %v51_v13 = vmul.f32 %v157_v12, %v42_v11 }
  0x27   :  { %v52_v14 = vmul.f32 1.442695, %v51_v13 }
  0x29   :  { %158 = vpow2.f32 %v52_v14 }
  0x33   :  { %v159_v15 = vpop.eup %158 }
  0x34   :  { %55 = vst.msk [vmem:[#allocation3] sm:$0x3] %vm54_vm0, %v159_v15 }
  0x3b   :  { %v57_v17 = vld [vmem:[#allocation3] sm:$0x3] }
  0x3c   :  { %v59_v18 = vadd.f32 %v58_v16, %v57_v17 }
  0x3e   :  { %vm60_vm1 = vcmp.gt.f32.partialorder %v59_v18, 0.999  ;;  %v143_v19 = vadd.f32 -0.999, %v59_v18 }
  0x3f   :  { %v61_v20 = vsel %vm60_vm1, 1.0, %v209_v1 }
  0x40   :  { %v62_v21 = vpack.c.bf16 %v61_v20, %v61_v20  ;;  %v66_v22 = vsel %vm60_vm1, %v143_v19, %v59_v18 }
  0x41   :  { %v67_v23 = vadd.f32 %v66_v22, %v57_v17 }
  0x42   :  { %64 = vst.msk [vmem:[#allocation7] sm:$0x1] %vm63_vm2, %v62_v21 }
  0x43   :  { %vm68_vm3 = vcmp.gt.f32.partialorder %v67_v23, 0.999  ;;  %v144_v24 = vadd.f32 -0.999, %v67_v23 }
  0x44   :  { %v69_v25 = vsel %vm68_vm3, 1.0, %v209_v1 }
  0x45   :  { %v70_v26 = vpack.c.bf16 %v69_v25, %v69_v25  ;;  %v74_v27 = vsel %vm68_vm3, %v144_v24, %v67_v23 }
  0x46   :  { %v75_v28 = vadd.f32 %v74_v27, %v57_v17 }
  0x47   :  { %72 = vst.msk [vmem:[#allocation7 + $0x1] sm:$0x1] %vm63_vm2, %v70_v26 }
  0x48   :  { %vm76_vm4 = vcmp.gt.f32.partialorder %v75_v28, 0.999  ;;  %v145_v29 = vadd.f32 -0.999, %v75_v28 }
  0x49   :  { %v77_v30 = vsel %vm76_vm4, 1.0, %v209_v1 }
  0x4a   :  { %v78_v31 = vpack.c.bf16 %v77_v30, %v77_v30  ;;  %v82_v32 = vsel %vm76_vm4, %v145_v29, %v75_v28 }
  0x4b   :  { %v83_v33 = vadd.f32 %v82_v32, %v57_v17 }
  0x4c   :  { %80 = vst.msk [vmem:[#allocation7 + $0x2] sm:$0x1] %vm63_vm2, %v78_v31 }
  0x4d   :  { %vm84_vm5 = vcmp.gt.f32.partialorder %v83_v33, 0.999  ;;  %v146_v34 = vadd.f32 -0.999, %v83_v33 }
  0x4e   :  { %v85_v35 = vsel %vm84_vm5, 1.0, %v209_v1 }
  0x4f   :  { %v86_v36 = vpack.c.bf16 %v85_v35, %v85_v35  ;;  %v90_v37 = vsel %vm84_vm5, %v146_v34, %v83_v33 }
  0x50   :  { %v91_v38 = vadd.f32 %v90_v37, %v57_v17 }
  0x51   :  { %88 = vst.msk [vmem:[#allocation7 + $0x3] sm:$0x1] %vm63_vm2, %v86_v36 }
  0x52   :  { %vm92_vm6 = vcmp.gt.f32.partialorder %v91_v38, 0.999  ;;  %v147_v39 = vadd.f32 -0.999, %v91_v38 }
  0x53   :  { %v93_v40 = vsel %vm92_vm6, 1.0, %v209_v1 }
  0x54   :  { %v94_v41 = vpack.c.bf16 %v93_v40, %v93_v40  ;;  %v98_v42 = vsel %vm92_vm6, %v147_v39, %v91_v38 }
  0x55   :  { %v99_v43 = vadd.f32 %v98_v42, %v57_v17 }
  0x56   :  { %96 = vst.msk [vmem:[#allocation7 + $0x4] sm:$0x1] %vm63_vm2, %v94_v41 }
  0x57   :  { %vm100_vm7 = vcmp.gt.f32.partialorder %v99_v43, 0.999  ;;  %v148_v44 = vadd.f32 -0.999, %v99_v43 }
  0x58   :  { %v101_v45 = vsel %vm100_vm7, 1.0, %v209_v1 }
  0x59   :  { %v102_v46 = vpack.c.bf16 %v101_v45, %v101_v45  ;;  %v106_v47 = vsel %vm100_vm7, %v148_v44, %v99_v43 }
  0x5a   :  { %v107_v48 = vadd.f32 %v106_v47, %v57_v17 }
  0x5b   :  { %104 = vst.msk [vmem:[#allocation7 + $0x5] sm:$0x1] %vm63_vm2, %v102_v46 }
  0x5c   :  { %vm108_vm8 = vcmp.gt.f32.partialorder %v107_v48, 0.999  ;;  %v149_v49 = vadd.f32 -0.999, %v107_v48 }
  0x5d   :  { %v109_v50 = vsel %vm108_vm8, 1.0, %v209_v1 }
  0x5e   :  { %v110_v51 = vpack.c.bf16 %v109_v50, %v109_v50  ;;  %v114_v52 = vsel %vm108_vm8, %v149_v49, %v107_v48 }
  0x5f   :  { %v115_v53 = vadd.f32 %v114_v52, %v57_v17 }
  0x60   :  { %112 = vst.msk [vmem:[#allocation7 + $0x6] sm:$0x1] %vm63_vm2, %v110_v51 }
  0x61   :  { %vm116_vm9 = vcmp.gt.f32.partialorder %v115_v53, 0.999  ;;  %v150_v54 = vadd.f32 -0.999, %v115_v53 }
  0x62   :  { %v117_v55 = vsel %vm116_vm9, 1.0, %v209_v1 }
  0x63   :  { %v122_v56 = vsel %vm116_vm9, %v150_v54, %v115_v53  ;;  %v118_v57 = vpack.c.bf16 %v117_v55, %v117_v55 }
  0x64   :  { %124 = vst.msk [vmem:[#allocation2] sm:$0x3] %vm54_vm0, %v122_v56 }
  0x65   :  { %120 = vst.msk [vmem:[#allocation7 + $0x7] sm:$0x1] %vm63_vm2, %v118_v57 }
  0x66   :  { %193 = shalt.err (!%p190_p12)
}
  0x67   :  { %s194_s30 = scalar_lea.hbm %s286_s3, 128 }
  0x68   :  { %p195_p13 = scmp.ne.s32.totalorder %s286_s3, %s194_s30  ;;  %p198_p0 = scmp.lt.u32.totalorder %s194_s30, %s286_s3 }
  0x6a   :  { %p200_p1 = pnand %p198_p0, %p195_p13 }
  0x6c   :  { %203 = shalt.err (!%p200_p1)
}
  0x6d   :  { %s211_s8 = smov 16   ;;  %s212_s9 = smov 1  }
  0x6e   :  { %136 = dma.vmem_to_hbm [thread:$0]  %s131_s1, 128, %s286_s3, [#allocation6], %s211_s8, %s211_s8, %s212_s9  }
  0x6f   :  { %206 = dma.done.wait [#allocation6], 128  }
  0x70   :  { %207 = vsyncadd [#allocation6], 4294967168 }
  0x71   :  { %140 = vsyncpa [#allocation5], 1 }
  0x72   :  { %141 = vsyncpa [#allocation6], 1 }

</bundles_post_ra>
